<compile_context>
chip_gen: v7x
topology: tpu7x:2x2x1
jax: 0.10.0
libtpu: 0.0.40
codegen_flags: <defaults>
</compile_context>

<pallas_src>
import jax
import jax.numpy as jnp
from jax.experimental import pallas as pl
from jax.experimental.pallas import tpu as pltpu

LRELU_SLOPE = 0.02
LN_EPS = 1e-5

IN_FEATURES = 784      # 28 * 28
HIDDEN = 200
IN_PAD = 896           # 784 -> 7 * 128  (lane aligned)
HID_PAD = 256          # 200 -> 2 * 128  (lane aligned)


def _round_up(n, m):
    return ((n + m - 1) // m) * m


def _discriminator_kernel(x_ref, w1_ref, b1_ref, g_ref, beta_ref, w2_ref, b2_ref, o_ref):
    """One batch tile.

    x_ref  : (TM, 896)  bf16  (zero-padded 784 -> 896)
    w1_ref : (896, 256) bf16  (zero-padded)
    b1/g/beta/w2_ref : (1, 256) f32 (zero-padded)
    b2_ref : (1, 1)    f32
    o_ref  : (TM, 1)   f32
    """
    # ---- Linear(784, 200): bf16 operands on the MXU, f32 accumulation ----
    h = jnp.dot(x_ref[...], w1_ref[...], preferred_element_type=jnp.float32)
    h = h + b1_ref[...]                                        # (TM, 256); padded lanes are exactly 0

    # ---- LayerNorm over the 200 valid lanes (biased variance, eps = 1e-5, affine) ----
    inv_n = 1.0 / HIDDEN
    mean = jnp.sum(h, axis=-1, keepdims=True) * inv_n          # padded lanes contribute 0 to the sum
    centered = h - mean
    lane = jax.lax.broadcasted_iota(jnp.int32, centered.shape, 1)
    centered = jnp.where(lane < HIDDEN, centered, 0.0)         # keep stats over exactly 200 elements
    var = jnp.sum(centered * centered, axis=-1, keepdims=True) * inv_n
    h_norm = centered * jax.lax.rsqrt(var + LN_EPS)
    h_norm = h_norm * g_ref[...] + beta_ref[...]

    # ---- LeakyReLU(0.02) ----
    h_act = jnp.where(h_norm >= 0, h_norm, LRELU_SLOPE * h_norm)

    # ---- Linear(200, 1) + Sigmoid: N=1 -> VPU multiply + lane reduce (skip degenerate MXU call) ----
    logits = jnp.sum(h_act * w2_ref[...], axis=-1, keepdims=True) + b2_ref[...]   # (TM, 1)
    o_ref[...] = jax.nn.sigmoid(logits)


def _pad2(a, rows, cols):
    return jnp.pad(a, ((0, rows - a.shape[0]), (0, cols - a.shape[1])))


def discriminator_forward(x, params, *, block_m=1024):
    """x: (B, 784) float32 -> (B, 1) float32 sigmoid probabilities."""
    w1, b1, gamma, beta, w2, b2 = params
    B = x.shape[0]

    # Lane-align feature dims and cast the matmul operands to bf16.
    x_p = _pad2(x, B, IN_PAD).astype(jnp.bfloat16)
    w1_p = _pad2(w1, IN_PAD, HID_PAD).astype(jnp.bfloat16)
    b1_p = _pad2(b1, 1, HID_PAD)
    g_p = _pad2(gamma, 1, HID_PAD)
    beta_p = _pad2(beta, 1, HID_PAD)
    w2_row = _pad2(w2.reshape(1, HIDDEN), 1, HID_PAD)          # (1, 256) f32, VPU path

    # Batch tile: multiple of 16 (bf16 sublane packing), capped so the block never exceeds the batch.
    tm = min(block_m, _round_up(B, 16))
    tm = max(16, _round_up(tm, 16))
    grid = (pl.cdiv(B, tm),)

    const = lambda i: (0, 0)                                   # weights stay VMEM-resident
    return pl.pallas_call(
        _discriminator_kernel,
        out_shape=jax.ShapeDtypeStruct((B, 1), jnp.float32),
        grid=grid,
        in_specs=[
            pl.BlockSpec((tm, IN_PAD), lambda i: (i, 0)),      # x: streamed, double-buffered by Pallas
            pl.BlockSpec((IN_PAD, HID_PAD), const),            # w1
            pl.BlockSpec((1, HID_PAD), const),                 # b1
            pl.BlockSpec((1, HID_PAD), const),                 # gamma
            pl.BlockSpec((1, HID_PAD), const),                 # beta
            pl.BlockSpec((1, HID_PAD), const),                 # w2 (as a row)
            pl.BlockSpec((1, 1), const),                       # b2
        ],
        out_specs=pl.BlockSpec((tm, 1), lambda i: (i, 0)),
        compiler_params=pltpu.CompilerParams(
            dimension_semantics=("parallel",),                 # 2 TCs on v7x; no-op on v5e/v6e
            vmem_limit_bytes=48 * 1024 * 1024,                 # headroom under v7x's 64 MiB VMEM
        ),
    )(x_p, w1_p, b1_p, g_p, beta_p, w2_row, b2)


def init_params(key):
    """Deterministic parameter init mimicking nn.Linear / nn.LayerNorm defaults."""
    k1, k2, k3, k4 = jax.random.split(key, 4)
    lim1 = 1.0 / jnp.sqrt(784.0)
    w1 = jax.random.uniform(k1, (784, 200), jnp.float32, -lim1, lim1)
    b1 = jax.random.uniform(k2, (1, 200), jnp.float32, -lim1, lim1)
    gamma = jnp.ones((1, 200), jnp.float32)
    beta = jnp.zeros((1, 200), jnp.float32)
    lim2 = 1.0 / jnp.sqrt(200.0)
    w2 = jax.random.uniform(k3, (200, 1), jnp.float32, -lim2, lim2)
    b2 = jax.random.uniform(k4, (1, 1), jnp.float32, -lim2, lim2)
    return (w1, b1, gamma, beta, w2, b2)


def reference_forward(x, params):
    w1, b1, gamma, beta, w2, b2 = params
    h = x @ w1 + b1
    mean = jnp.mean(h, axis=-1, keepdims=True)
    var = jnp.mean((h - mean) ** 2, axis=-1, keepdims=True)
    hn = (h - mean) / jnp.sqrt(var + LN_EPS) * gamma + beta
    hn = jnp.where(hn >= 0, hn, LRELU_SLOPE * hn)
    return jax.nn.sigmoid(hn @ w2 + b2)


if __name__ == "__main__":
    key = jax.random.PRNGKey(0)
    k_params, k_x = jax.random.split(key)
    params = init_params(k_params)

    B = 48  # small test batch; block_m=16 below gives a 3-step grid to exercise the tiling
    x = jax.random.normal(k_x, (B, 784), jnp.float32)

    out = discriminator_forward(x, params, block_m=16)
    out = jax.block_until_ready(out)

    ref = reference_forward(x, params)
    assert out.shape == (B, 1)
    # bf16 matmul operands -> compare against the pure-f32 reference with a loosened tolerance.
    assert jnp.allclose(out, ref, atol=2e-2, rtol=2e-2), "mismatch vs pure-JAX reference"

    print("KERNEL_OK")
</pallas_src>

<mosaic_0001>
module attributes {stable_mosaic.version = 11 : i64} {
  func.func @_discriminator_kernel(%arg0: i32, %arg1: memref<16x896xbf16, #tpu.memory_space<vmem>>, %arg2: memref<896x256xbf16, #tpu.memory_space<vmem>>, %arg3: memref<1x256xf32, #tpu.memory_space<vmem>>, %arg4: memref<1x256xf32, #tpu.memory_space<vmem>>, %arg5: memref<1x256xf32, #tpu.memory_space<vmem>>, %arg6: memref<1x256xf32, #tpu.memory_space<vmem>>, %arg7: memref<1x1xf32, #tpu.memory_space<vmem>>, %arg8: memref<16x1xf32, #tpu.memory_space<vmem>>) attributes {dimension_semantics = [#tpu.dimension_semantics<parallel>], iteration_bounds = array<i64: 3>, scalar_prefetch = 0 : i64, scratch_operands = 0 : i64, tpu.core_type = #tpu.core_type<tc>, window_params = [{transform_indices = @transform_0, window_bounds = array<i64: 16, 896>}, {pipeline_mode = #tpu.pipeline_mode<synchronous>, transform_indices = @transform_1, window_bounds = array<i64: 896, 256>}, {pipeline_mode = #tpu.pipeline_mode<synchronous>, transform_indices = @transform_2, window_bounds = array<i64: 1, 256>}, {pipeline_mode = #tpu.pipeline_mode<synchronous>, transform_indices = @transform_3, window_bounds = array<i64: 1, 256>}, {pipeline_mode = #tpu.pipeline_mode<synchronous>, transform_indices = @transform_4, window_bounds = array<i64: 1, 256>}, {pipeline_mode = #tpu.pipeline_mode<synchronous>, transform_indices = @transform_5, window_bounds = array<i64: 1, 256>}, {pipeline_mode = #tpu.pipeline_mode<synchronous>, transform_indices = @transform_6, window_bounds = array<i64: 1, 1>}, {transform_indices = @transform_7, window_bounds = array<i64: 16, 1>}]} {
    %c0 = arith.constant 0 : index
    %c0_0 = arith.constant 0 : index
    %0 = vector.load %arg1[%c0, %c0_0] : memref<16x896xbf16, #tpu.memory_space<vmem>>, vector<16x896xbf16>
    %c0_1 = arith.constant 0 : index
    %c0_2 = arith.constant 0 : index
    %1 = vector.load %arg2[%c0_1, %c0_2] : memref<896x256xbf16, #tpu.memory_space<vmem>>, vector<896x256xbf16>
    %cst = arith.constant dense<0.000000e+00> : vector<16x256xf32>
    %2 = tpu.matmul %0, %1, %cst {dimension_numbers = #tpu.dot_dimension_numbers<[1], [0], [0], [1], [0, 0, 1, 1], [], []>} : vector<16x896xbf16>, vector<896x256xbf16>, vector<16x256xf32> -> vector<16x256xf32>
    %c0_3 = arith.constant 0 : index
    %c0_4 = arith.constant 0 : index
    %3 = vector.load %arg3[%c0_3, %c0_4] : memref<1x256xf32, #tpu.memory_space<vmem>>, vector<1x256xf32>
    %4 = vector.broadcast %3 : vector<1x256xf32> to vector<16x256xf32>
    %5 = arith.addf %2, %4 : vector<16x256xf32>
    %cst_5 = arith.constant dense<0.000000e+00> : vector<16xf32>
    %6 = vector.multi_reduction <add>, %5, %cst_5 [1] : vector<16x256xf32> to vector<16xf32>
    %7 = vector.shape_cast %6 : vector<16xf32> to vector<16x1xf32>
    %cst_6 = arith.constant 5.000000e-03 : f32
    %8 = vector.broadcast %cst_6 : f32 to vector<16x1xf32>
    %9 = arith.mulf %7, %8 : vector<16x1xf32>
    %10 = vector.broadcast %9 : vector<16x1xf32> to vector<16x256xf32>
    %11 = arith.subf %5, %10 : vector<16x256xf32>
    %12 = tpu.iota {dimensions = array<i32: 1>} : vector<16x256xi32>
    %c200_i32 = arith.constant 200 : i32
    %13 = vector.broadcast %c200_i32 : i32 to vector<16x256xi32>
    %14 = arith.cmpi slt, %12, %13 : vector<16x256xi32>
    %cst_7 = arith.constant 0.000000e+00 : f32
    %15 = vector.broadcast %cst_7 : f32 to vector<16x256xf32>
    %16 = arith.select %14, %11, %15 : vector<16x256xi1>, vector<16x256xf32>
    %17 = arith.mulf %16, %16 : vector<16x256xf32>
    %cst_8 = arith.constant dense<0.000000e+00> : vector<16xf32>
    %18 = vector.multi_reduction <add>, %17, %cst_8 [1] : vector<16x256xf32> to vector<16xf32>
    %19 = vector.shape_cast %18 : vector<16xf32> to vector<16x1xf32>
    %cst_9 = arith.constant 5.000000e-03 : f32
    %20 = vector.broadcast %cst_9 : f32 to vector<16x1xf32>
    %21 = arith.mulf %19, %20 : vector<16x1xf32>
    %cst_10 = arith.constant 9.99999974E-6 : f32
    %22 = vector.broadcast %cst_10 : f32 to vector<16x1xf32>
    %23 = arith.addf %21, %22 : vector<16x1xf32>
    %24 = math.rsqrt %23 : vector<16x1xf32>
    %25 = vector.broadcast %24 : vector<16x1xf32> to vector<16x256xf32>
    %26 = arith.mulf %16, %25 : vector<16x256xf32>
    %c0_11 = arith.constant 0 : index
    %c0_12 = arith.constant 0 : index
    %27 = vector.load %arg4[%c0_11, %c0_12] : memref<1x256xf32, #tpu.memory_space<vmem>>, vector<1x256xf32>
    %28 = vector.broadcast %27 : vector<1x256xf32> to vector<16x256xf32>
    %29 = arith.mulf %26, %28 : vector<16x256xf32>
    %c0_13 = arith.constant 0 : index
    %c0_14 = arith.constant 0 : index
    %30 = vector.load %arg5[%c0_13, %c0_14] : memref<1x256xf32, #tpu.memory_space<vmem>>, vector<1x256xf32>
    %31 = vector.broadcast %30 : vector<1x256xf32> to vector<16x256xf32>
    %32 = arith.addf %29, %31 : vector<16x256xf32>
    %cst_15 = arith.constant 0.000000e+00 : f32
    %33 = vector.broadcast %cst_15 : f32 to vector<16x256xf32>
    %34 = arith.cmpf oge, %32, %33 : vector<16x256xf32>
    %cst_16 = arith.constant 2.000000e-02 : f32
    %35 = vector.broadcast %cst_16 : f32 to vector<16x256xf32>
    %36 = arith.mulf %35, %32 : vector<16x256xf32>
    %37 = arith.select %34, %32, %36 : vector<16x256xi1>, vector<16x256xf32>
    %c0_17 = arith.constant 0 : index
    %c0_18 = arith.constant 0 : index
    %38 = vector.load %arg6[%c0_17, %c0_18] : memref<1x256xf32, #tpu.memory_space<vmem>>, vector<1x256xf32>
    %39 = vector.broadcast %38 : vector<1x256xf32> to vector<16x256xf32>
    %40 = arith.mulf %37, %39 : vector<16x256xf32>
    %cst_19 = arith.constant dense<0.000000e+00> : vector<16xf32>
    %41 = vector.multi_reduction <add>, %40, %cst_19 [1] : vector<16x256xf32> to vector<16xf32>
    %42 = vector.shape_cast %41 : vector<16xf32> to vector<16x1xf32>
    %c0_20 = arith.constant 0 : index
    %c0_21 = arith.constant 0 : index
    %43 = vector.load %arg7[%c0_20, %c0_21] : memref<1x1xf32, #tpu.memory_space<vmem>>, vector<1x1xf32>
    %44 = vector.broadcast %43 : vector<1x1xf32> to vector<16x1xf32>
    %45 = arith.addf %42, %44 : vector<16x1xf32>
    %46 = arith.negf %45 : vector<16x1xf32>
    %47 = math.exp %46 : vector<16x1xf32>
    %cst_22 = arith.constant 1.000000e+00 : f32
    %48 = vector.broadcast %cst_22 : f32 to vector<16x1xf32>
    %49 = arith.addf %48, %47 : vector<16x1xf32>
    %50 = arith.divf %48, %49 : vector<16x1xf32>
    %c0_23 = arith.constant 0 : index
    %c0_24 = arith.constant 0 : index
    %51 = vector.load %arg8[%c0_23, %c0_24] : memref<16x1xf32, #tpu.memory_space<vmem>>, vector<16x1xf32>
    tpu.vector_store %arg8[%c0_23, %c0_24], %50 {strides = array<i32>} : memref<16x1xf32, #tpu.memory_space<vmem>>, vector<16x1xf32>,
    return
  }
  func.func @transform_0(%arg0: i32) -> (i32, i32) {
    %c0_i32 = arith.constant 0 : i32
    %c0_i32_0 = arith.constant 0 : i32
    return %arg0, %c0_i32 : i32, i32
  }
  func.func @transform_1(%arg0: i32) -> (i32, i32) {
    %c0_i32 = arith.constant 0 : i32
    %c0_i32_0 = arith.constant 0 : i32
    %c0_i32_1 = arith.constant 0 : i32
    return %c0_i32, %c0_i32_0 : i32, i32
  }
  func.func @transform_2(%arg0: i32) -> (i32, i32) {
    %c0_i32 = arith.constant 0 : i32
    %c0_i32_0 = arith.constant 0 : i32
    %c0_i32_1 = arith.constant 0 : i32
    return %c0_i32, %c0_i32_0 : i32, i32
  }
  func.func @transform_3(%arg0: i32) -> (i32, i32) {
    %c0_i32 = arith.constant 0 : i32
    %c0_i32_0 = arith.constant 0 : i32
    %c0_i32_1 = arith.constant 0 : i32
    return %c0_i32, %c0_i32_0 : i32, i32
  }
  func.func @transform_4(%arg0: i32) -> (i32, i32) {
    %c0_i32 = arith.constant 0 : i32
    %c0_i32_0 = arith.constant 0 : i32
    %c0_i32_1 = arith.constant 0 : i32
    return %c0_i32, %c0_i32_0 : i32, i32
  }
  func.func @transform_5(%arg0: i32) -> (i32, i32) {
    %c0_i32 = arith.constant 0 : i32
    %c0_i32_0 = arith.constant 0 : i32
    %c0_i32_1 = arith.constant 0 : i32
    return %c0_i32, %c0_i32_0 : i32, i32
  }
  func.func @transform_6(%arg0: i32) -> (i32, i32) {
    %c0_i32 = arith.constant 0 : i32
    %c0_i32_0 = arith.constant 0 : i32
    %c0_i32_1 = arith.constant 0 : i32
    return %c0_i32, %c0_i32_0 : i32, i32
  }
  func.func @transform_7(%arg0: i32) -> (i32, i32) {
    %c0_i32 = arith.constant 0 : i32
    %c0_i32_0 = arith.constant 0 : i32
    return %arg0, %c0_i32 : i32, i32
  }
}

</mosaic_0001>

<bundles_post_ra>
// kernel: tpu_custom_call.1
= control target key start
LH: loop header
LB: loop body
LE: loop exit
PB: predicated region body
PF: predicated region fallthrough
CT: control target
= control target key end

     0   :  { %s2154_s0 = inlined_call_operand.hbm [shape: bf16[48,896], index: 0, kind: input, shape index: {}]   ;;  %s2155_s1 = inlined_call_operand.hbm [shape: bf16[896,256], index: 1, kind: input, shape index: {}]   ;;  %s2156_s2 = inlined_call_operand.vmem [shape: f32[1,256], index: 2, kind: input, shape index: {}]   ;;  %s2157_s3 = inlined_call_operand.vmem [shape: f32[1,256], index: 3, kind: input, shape index: {}]   ;;  %s2158_s4 = inlined_call_operand.vmem [shape: f32[1,256], index: 4, kind: input, shape index: {}]   ;;  %s2159_s5 = inlined_call_operand.vmem [shape: f32[1,256], index: 5, kind: input, shape index: {}]   ;;  %s2160_s6 = inlined_call_operand.<no memory space> [shape: f32[1,1], index: 6, kind: input, shape index: {}]   ;;  %s2161_s7 = inlined_call_operand.vmem [shape: f32[48,1], index: 7, kind: output, shape index: {}]  }
   0x1   :  { %v12_v0 = vstv %s2160_s6 }
   0x2   :  { %13 = vst [vmem:[#allocation2] sm:$0x1] %v12_v0 }
   0x3   :  { %14 = vsyncpa [#allocation4], 0 }
   0x4   :  { %16 = vsyncpa [#allocation4 + $0x1], 0 }
   0x5   :  { %17 = vsyncpa [#allocation6], 0  ;;  %s1976_s26 = smov 0   ;;  %s1978_s27 = smov 0  }
   0x6   :  { %s1980_s28 = smov 0   ;;  %s1982_s29 = smov 0  }
   0x7 LB: > { %s1428_s6 = sadd.s32 4294967295, %s1924_s29   ;;  %p43_p0 = scmp.ne.s32.totalorder %s1916_s27, %s1912_s26  ;;  %s1924_s29 = sphi %s1982_s29, %s2177_s29   ;;  %s1920_s28 = sphi %s1980_s28, %s2176_s28   ;;  %s1916_s27 = sphi %s1978_s27, %s2175_s27   ;;  %s1912_s26 = sphi %s1976_s26, %s2174_s26  }
   0x8   : > { %p1998_p1 = scmp.eq.s32.totalorder %s1428_s6, 0  ;;  %p1430_p2 = scmp.ge.s32.totalorder %s1924_s29, 1 }
   0x9   : > { %p206_p3 = scmp.lt.s32.totalorder %s1924_s29, 4  ;;  %s1926_s10 = smov [#allocation5]  }
   0xa   : > { %s2166_s30 = scalar_select %p1998_p1, 1, 0 }
   0xb   : > { %p2006_p4 = por %p1998_p1, %p43_p0  ;;  %p2010_p5 = pnand %p1430_p2, %p206_p3 }
   0xc   : > { %s218_s11 = sshll.u32 %s1926_s10, 4  ;;  %s2023_s13 = sadd.s32 1, %s1924_s29   ;;  %s219_s11 = int_to_ptr.vmem [resolvable:$true] %s218_s11 }
   0xd   : > { %s2167_s8 = scalar_select %p2006_p4, 1, 0 }
   0xe   : > { %s2168_s9 = scalar_select %p2010_p5, 1, 0 }
   0xf   : > { %p1589_p6 = pneg %p2010_p5  ;;  %s30_s14 = sadd.s32 1, %s1920_s28 }
  0x10   : > { %s27_s15 = ssub.s32 %s1924_s29, %s2023_s13  ;;  %s1828_s18 = scalar_lea.hbm %s2155_s1, 14336 }
  0x11   : > { %p2018_p7 = pnand %p1589_p6, %p1998_p1  ;;  %p1829_p8 = scmp.ne.s32.totalorder %s2155_s1, %s1828_s18 }
  0x12   : > { %p1835_p12 = scmp.lt.u32.totalorder %s1828_s18, %s2155_s1 }
  0x13   : > { %p1830_p9 = pneg %p2018_p7 }
  0x15   : > { %p1831_p10 = pnand %p1830_p9, %p1829_p8 }
  0x17   : > { %p1832_p11 = pneg %p1831_p10 }
  0x19   : > { %p1837_p13 = pnand %p1835_p12, %p1832_p11 }
  0x1b   : > { %1840 = shalt.err (!%p1837_p13)
}
  0x1c   : > { %s1841_s23 = scalar_lea.vmem %s219_s11, 14336  ;;  %p1849_p6 = scmp.lt.s32.totalorder %s219_s11, %s219_s11 }
  0x1d   : > { %p1842_p0 = scmp.ne.s32.totalorder %s219_s11, %s1841_s23  ;;  %p1850_p1 = scmp.lt.s32.totalorder %s1841_s23, %s1841_s23 }
  0x1f   : > { %p1844_p2 = pnand %p1842_p0, %p1830_p9  ;;  %p1851_p4 = por %p1850_p1, %p1849_p6 }
  0x21   : > { %p1845_p3 = pneg %p1844_p2 }
  0x23   : > { %p1852_p5 = pnand %p1851_p4, %p1845_p3 }
  0x25   : > { %1855 = shalt.err (!%p1852_p5)
}
  0x26   : > { %s1927_s24 = smov 128   ;;  %s1928_s25 = smov 8  }
  0x27   : > { %1592 = dma.hbm_to_vmem [thread:$0]  (!%p2018_p7), %s2155_s1, 14336, %s219_s11, [#allocation6], %s1927_s24, %s1927_s24, %s1928_s25  }
  0x28   : > { %p28_p8 = scmp.eq.s32.totalorder %s27_s15, 0  ;;  %p37_p9 = scmp.ne.s32.totalorder %s1920_s28, %s1916_s27 }
  0x29   : > { %p38_p1 = scmp.eq.s32.totalorder %s1924_s29, 0  ;;  %p1598_p4 = scmp.lt.s32.totalorder %s1924_s29, 3 }
  0x2a   : > { %s2049_s16 = scalar_select %p28_p8, %s1920_s28, %s30_s14  }
  0x2b   : > { %p39_p5 = por %p38_p1, %p37_p9  ;;  %s247_s17 = sand.u32 1, %s1920_s28  }
  0x2c   : > { %s1580_s18 = smul.u32 56, %s247_s17  ;;  %s2064_s22 = scalar_lea.sflag [#allocation4], %s247_s17 }
  0x2d   : > { %s1581_s19 = smul.u32 896, %s1924_s29  ;;  %p2053_p10 = pnand %p1598_p4, %p39_p5 }
  0x2e   : > { %s251_s14 = scalar_lea.vmem [#allocation3], %s1580_s18  ;;  %s1861_s26 = scalar_lea.hbm %s2154_s0, 2688 }
  0x2f   : > { %s2060_s11 = scalar_lea.hbm %s2154_s0, %s1581_s19  ;;  %s259_s15 = sshll.u32 %s251_s14, 4  ;;  %s2062_s15 = int_to_ptr.vmem [resolvable:$true] %s259_s15 }
  0x30   : > { %s1856_s23 = scalar_lea.hbm %s2060_s11, 896  ;;  %p1858_p11 = pneg %p2053_p10 }
  0x31   : > { %p1857_p7 = scmp.ne.s32.totalorder %s2060_s11, %s1856_s23  ;;  %p1862_p0 = scmp.lt.u32.totalorder %s2060_s11, %s2154_s0 }
  0x32   : > { %p1863_p2 = scmp.lt.u32.totalorder %s1861_s26, %s1856_s23  ;;  %p1865_p6 = scmp.lt.u32.totalorder %s1856_s23, %s2060_s11 }
  0x33   : > { %p1859_p12 = pnand %p1858_p11, %p1857_p7 }
  0x34   : > { %p1864_p3 = por %p1863_p2, %p1862_p0 }
  0x35   : > { %p1860_p13 = pneg %p1859_p12 }
  0x36   : > { %p1866_p8 = por %p1865_p6, %p1864_p3 }
  0x38   : > { %p1867_p9 = pnand %p1866_p8, %p1860_p13 }
  0x3a   : > { %1870 = shalt.err (!%p1867_p9)
}
  0x3b   : > { %s1871_s17 = scalar_lea.vmem %s2062_s15, 896  ;;  %s1929_s18 = smov [#allocation3]  }
  0x3c   : > { %p1872_p1 = scmp.ne.s32.totalorder %s2062_s15, %s1871_s17  ;;  %s1876_s21 = sshll.u32 %s1929_s18, 4  ;;  %s1877_s21 = int_to_ptr.vmem [resolvable:$false] %s1876_s21 }
  0x3d   : > { %s1878_s12 = scalar_lea.vmem %s1877_s21, 1792  ;;  %p1879_p7 = scmp.lt.s32.totalorder %s2062_s15, %s1877_s21 }
  0x3e   : > { %p1874_p4 = pnand %p1872_p1, %p1858_p11  ;;  %p1880_p12 = scmp.lt.s32.totalorder %s1878_s12, %s1871_s17 }
  0x40   : > { %p1875_p5 = pneg %p1874_p4  ;;  %p1881_p0 = por %p1880_p12, %p1879_p7 }
  0x42   : > { %p1882_p2 = pnand %p1881_p0, %p1875_p5 }
  0x44   : > { %1885 = shalt.err (!%p1882_p2)
}
  0x45   : > { %s1930_s14 = smov 448   ;;  %s1931_s23 = smov 28  }
  0x46   : > { %1596 = dma.hbm_to_vmem [thread:$0]  (!%p2053_p10), %s2060_s11, 896, %s2062_s15, %s2064_s22, %s1930_s14, %s1930_s14, %s1931_s23  }
  0x47   : > { %p2171_p11 = scmp.ne.s32.totalorder %s2168_s9, 0 }
  0x48   : > { %s273_s24 = sand.u32 (!%p2171_p11), 1, %s1916_s27   ;;  %p2172_p13 = scmp.ne.s32.totalorder (!%p2171_p11), %s2167_s8, 0 }
  0x49   : > { %271 = sbr.rel (%p2171_p11) target bundleno = 930 (0x3a2), region = 48  ;;  %s274_s26 = scalar_lea.sflag (!%p2171_p11), [#allocation4], %s273_s24 }
  0x4a   : > { %s1582_s25 = smul.u32 (!%p2171_p11), 56, %s273_s24 }
  0x4c   : > { %s2095_s10 = scalar_lea.vmem (!%p2171_p11), [#allocation3], %s1582_s25 }
  0x50   : > { %1903 = dma.done.wait (%p2172_p13), %s274_s26, 896  }
  0x51   : > { %1905 = vsyncadd (%p2172_p13), %s274_s26, 4294966400  ;;  %p2173_p3 = scmp.ne.s32.totalorder %s2166_s30, 0 }
  0x53   : > { %1907 = dma.done.wait (%p2173_p3), [#allocation6], 14336  }
  0x54   : > { %1909 = vsyncadd (%p2173_p3), [#allocation6], 4294952960  ;;  %v1638_v1 = vld [vmem:[#allocation5 + $0x4] ss:$8 sps:$4 sm:$0xff]   ;;  %v1642_v3 = vld [vmem:[#allocation5] ss:$8 sps:$4 sm:$0xff]  }
  0x55   : > { %v1640_v2 = vld [vmem:[#allocation5 + $0x204] ss:$8 sps:$4 sm:$0xff]   ;;  %1048 = vmatprep.subr.bf16.mxu1 %v1638_v1  ;;  %v1643_v4 = vld [vmem:[#allocation5 + $0x200] ss:$8 sps:$4 sm:$0xff]   ;;  %v1644_v5 = vld [vmem:[#allocation5 + $0x14] ss:$8 sps:$4 sm:$0xff]  }
  0x56   : > { %1134 = vmatprep.subr.bf16.mxu0 %v1640_v2  ;;  %1049 = vmatpush1.bf16.msra.mxu1 %v1642_v3  ;;  %v1646_v6 = vld [vmem:[#allocation5 + $0x214] ss:$8 sps:$4 sm:$0xff]   ;;  %v1648_v7 = vld [vmem:[#allocation5 + $0x10] ss:$8 sps:$4 sm:$0xff]   ;;  %v1650_v9 = vld [vmem:[#allocation5 + $0x24] ss:$8 sps:$4 sm:$0xff]  }
  0x57   : > { %1135 = vmatpush1.bf16.msra.mxu0 %v1643_v4  ;;  %1050 = vmatprep.subr.bf16.mxu1 %v1644_v5  ;;  %v1649_v8 = vld [vmem:[#allocation5 + $0x210] ss:$8 sps:$4 sm:$0xff]   ;;  %v1652_v10 = vld [vmem:[#allocation5 + $0x224] ss:$8 sps:$4 sm:$0xff]   ;;  %v1654_v11 = vld [vmem:[#allocation5 + $0x20] ss:$8 sps:$4 sm:$0xff]  }
  0x58   : > { %1136 = vmatprep.subr.bf16.mxu0 %v1646_v6  ;;  %v1655_v12 = vld [vmem:[#allocation5 + $0x220] ss:$8 sps:$4 sm:$0xff]   ;;  %v1656_v13 = vld [vmem:[#allocation5 + $0x34] ss:$8 sps:$4 sm:$0xff]   ;;  %v1660_v15 = vld [vmem:[#allocation5 + $0x30] ss:$8 sps:$4 sm:$0xff]  }
  0x59   : > { %v1658_v14 = vld [vmem:[#allocation5 + $0x234] ss:$8 sps:$4 sm:$0xff]   ;;  %v1661_v16 = vld [vmem:[#allocation5 + $0x230] ss:$8 sps:$4 sm:$0xff]   ;;  %v1662_v17 = vld [vmem:[#allocation5 + $0x44] ss:$8 sps:$4 sm:$0xff]  }
  0x5a   : > { %1051 = vmatpush1.bf16.msra.mxu1 %v1648_v7  ;;  %v1664_v18 = vld [vmem:[#allocation5 + $0x244] ss:$8 sps:$4 sm:$0xff]   ;;  %v1666_v19 = vld [vmem:[#allocation5 + $0x40] ss:$8 sps:$4 sm:$0xff]   ;;  %v1668_v21 = vld [vmem:[#allocation5 + $0x54] ss:$8 sps:$4 sm:$0xff]  }
  0x5b   : > { %1137 = vmatpush1.bf16.msra.mxu0 %v1649_v8  ;;  %1052 = vmatprep.subr.bf16.mxu1 %v1650_v9  ;;  %v1667_v20 = vld [vmem:[#allocation5 + $0x240] ss:$8 sps:$4 sm:$0xff]   ;;  %v1670_v22 = vld [vmem:[#allocation5 + $0x254] ss:$8 sps:$4 sm:$0xff]   ;;  %v1672_v23 = vld [vmem:[#allocation5 + $0x50] ss:$8 sps:$4 sm:$0xff]  }
  0x5c   : > { %1138 = vmatprep.subr.bf16.mxu0 %v1652_v10  ;;  %v1673_v24 = vld [vmem:[#allocation5 + $0x250] ss:$8 sps:$4 sm:$0xff]   ;;  %v1674_v25 = vld [vmem:[#allocation5 + $0x64] ss:$8 sps:$4 sm:$0xff]   ;;  %v1678_v27 = vld [vmem:[#allocation5 + $0x60] ss:$8 sps:$4 sm:$0xff]  }
  0x5d   : > { %v1676_v26 = vld [vmem:[#allocation5 + $0x264] ss:$8 sps:$4 sm:$0xff]   ;;  %v1679_v28 = vld [vmem:[#allocation5 + $0x260] ss:$8 sps:$4 sm:$0xff]   ;;  %v1680_v29 = vld [vmem:[#allocation5 + $0x74] ss:$8 sps:$4 sm:$0xff]  }
  0x5e   : > { %1053 = vmatpush1.bf16.msra.mxu1 %v1654_v11  ;;  %v1682_v30 = vld [vmem:[#allocation5 + $0x274] ss:$8 sps:$4 sm:$0xff]   ;;  %v1684_v31 = vld [vmem:[#allocation5 + $0x70] ss:$8 sps:$4 sm:$0xff]   ;;  %v1686_v33 = vld [vmem:[#allocation5 + $0x84] ss:$8 sps:$4 sm:$0xff]  }
  0x5f   : > { %1139 = vmatpush1.bf16.msra.mxu0 %v1655_v12  ;;  %1054 = vmatprep.subr.bf16.mxu1 %v1656_v13  ;;  %v1685_v32 = vld [vmem:[#allocation5 + $0x270] ss:$8 sps:$4 sm:$0xff]   ;;  %v1688_v34 = vld [vmem:[#allocation5 + $0x284] ss:$8 sps:$4 sm:$0xff]   ;;  %v1690_v35 = vld [vmem:[#allocation5 + $0x80] ss:$8 sps:$4 sm:$0xff]  }
  0x60   : > { %1140 = vmatprep.subr.bf16.mxu0 %v1658_v14  ;;  %v1691_v36 = vld [vmem:[#allocation5 + $0x280] ss:$8 sps:$4 sm:$0xff]   ;;  %v1692_v37 = vld [vmem:[#allocation5 + $0x94] ss:$8 sps:$4 sm:$0xff]   ;;  %v1696_v39 = vld [vmem:[#allocation5 + $0x90] ss:$8 sps:$4 sm:$0xff]  }
  0x61   : > { %v1694_v38 = vld [vmem:[#allocation5 + $0x294] ss:$8 sps:$4 sm:$0xff]   ;;  %v1697_v40 = vld [vmem:[#allocation5 + $0x290] ss:$8 sps:$4 sm:$0xff]   ;;  %v1698_v41 = vld [vmem:[#allocation5 + $0xa4] ss:$8 sps:$4 sm:$0xff]  }
  0x62   : > { %1055 = vmatpush1.bf16.msra.mxu1 %v1660_v15  ;;  %v1700_v42 = vld [vmem:[#allocation5 + $0x2a4] ss:$8 sps:$4 sm:$0xff]   ;;  %v1702_v43 = vld [vmem:[#allocation5 + $0xa0] ss:$8 sps:$4 sm:$0xff]   ;;  %v1704_v45 = vld [vmem:[#allocation5 + $0xb4] ss:$8 sps:$4 sm:$0xff]  }
  0x63   : > { %1141 = vmatpush1.bf16.msra.mxu0 %v1661_v16  ;;  %1056 = vmatprep.subr.bf16.mxu1 %v1662_v17  ;;  %v1703_v44 = vld [vmem:[#allocation5 + $0x2a0] ss:$8 sps:$4 sm:$0xff]   ;;  %v1706_v46 = vld [vmem:[#allocation5 + $0x2b4] ss:$8 sps:$4 sm:$0xff]   ;;  %v1708_v47 = vld [vmem:[#allocation5 + $0xb0] ss:$8 sps:$4 sm:$0xff]  }
  0x64   : > { %1142 = vmatprep.subr.bf16.mxu0 %v1664_v18  ;;  %v1709_v48 = vld [vmem:[#allocation5 + $0x2b0] ss:$8 sps:$4 sm:$0xff]   ;;  %v1710_v50 = vld [vmem:[#allocation5 + $0xc4] ss:$8 sps:$4 sm:$0xff]   ;;  %v1714_v53 = vld [vmem:[#allocation5 + $0xc0] ss:$8 sps:$4 sm:$0xff]  }
  0x65   : > { %v1736_v49 = vld [vmem:[%s2095_s10 + $0x4] ss:$28 sps:$4 sm:$0xff]   ;;  %v1742_v52 = vld [vmem:[%s2095_s10 + $0x14] ss:$28 sps:$4 sm:$0xff]   ;;  %v1932_v15 = vmov 0   ;;  %s1438_s17 = sshll.u32 %s1428_s6, 1 }
  0x66   : > { %1057 = vmatpush1.bf16.msra.mxu1 %v1666_v19  ;;  %v1712_v51 = vld [vmem:[#allocation5 + $0x2c4] ss:$8 sps:$4 sm:$0xff]   ;;  %1080 = vmatprep.mubr.bf16.mxu1 %v1736_v49  ;;  %v1715_v54 = vld [vmem:[#allocation5 + $0x2c0] ss:$8 sps:$4 sm:$0xff]   ;;  %v1716_v55 = vld [vmem:[#allocation5 + $0xd4] ss:$8 sps:$4 sm:$0xff]  }
  0x67   : > { %1143 = vmatpush1.bf16.msra.mxu0 %v1667_v20  ;;  %1058 = vmatprep.subr.bf16.mxu1 %v1668_v21  ;;  %v1718_v56 = vld [vmem:[#allocation5 + $0x2d4] ss:$8 sps:$4 sm:$0xff]   ;;  %v1720_v57 = vld [vmem:[#allocation5 + $0xd0] ss:$8 sps:$4 sm:$0xff]   ;;  %v1722_v59 = vld [vmem:[#allocation5 + $0xe4] ss:$8 sps:$4 sm:$0xff]  }
  0x68   : > { %1144 = vmatprep.subr.bf16.mxu0 %v1670_v22  ;;  %1166 = vmatprep.mubr.bf16.mxu0 %v1742_v52  ;;  %v1721_v58 = vld [vmem:[#allocation5 + $0x2d0] ss:$8 sps:$4 sm:$0xff]   ;;  %v1724_v60 = vld [vmem:[#allocation5 + $0x2e4] ss:$8 sps:$4 sm:$0xff]   ;;  %v1726_v61 = vld [vmem:[#allocation5 + $0xe0] ss:$8 sps:$4 sm:$0xff]  }
  0x69   : > { %v1727_v62 = vld [vmem:[#allocation5 + $0x2e0] ss:$8 sps:$4 sm:$0xff]   ;;  %v1728_v63 = vld [vmem:[#allocation5 + $0xf4] ss:$8 sps:$4 sm:$0xff]   ;;  %v1732_v1 = vld [vmem:[#allocation5 + $0xf0] ss:$8 sps:$4 sm:$0xff]  }
  0x6a   : > { %1059 = vmatpush1.bf16.msra.mxu1 %v1672_v23  ;;  %v1730_v0 = vld [vmem:[#allocation5 + $0x2f4] ss:$8 sps:$4 sm:$0xff]   ;;  %v1733_v2 = vld [vmem:[#allocation5 + $0x2f0] ss:$8 sps:$4 sm:$0xff]   ;;  %v1739_v3 = vld [vmem:[#allocation5 + $0x104] ss:$8 sps:$4 sm:$0xff]  }
  0x6b   : > { %1145 = vmatpush1.bf16.msra.mxu0 %v1673_v24  ;;  %1060 = vmatprep.subr.bf16.mxu1 %v1674_v25  ;;  %v1745_v4 = vld [vmem:[#allocation5 + $0x304] ss:$8 sps:$4 sm:$0xff]   ;;  %v1737_v6 = vld [vmem:[#allocation5 + $0x100] ss:$8 sps:$4 sm:$0xff]   ;;  %v1748_v9 = vld [vmem:[#allocation5 + $0x114] ss:$8 sps:$4 sm:$0xff]  }
  0x6c   : > { %1146 = vmatprep.subr.bf16.mxu0 %v1676_v26  ;;  %v1734_v5 = vld [vmem:[%s2095_s10] ss:$28 sps:$4 sm:$0xff]   ;;  %v1740_v7 = vld [vmem:[%s2095_s10 + $0x10] ss:$28 sps:$4 sm:$0xff]   ;;  %p314_p10 = scmp.lt.s32.totalorder %s1438_s17, 5  ;;  %vm1348_vm5 = vcmask 7168  }
  0x6d   : > { %v1743_v8 = vld [vmem:[#allocation5 + $0x300] ss:$8 sps:$4 sm:$0xff]   ;;  %v1751_v10 = vld [vmem:[#allocation5 + $0x314] ss:$8 sps:$4 sm:$0xff]   ;;  %v1746_v11 = vld [vmem:[#allocation5 + $0x110] ss:$8 sps:$4 sm:$0xff]  }
  0x6e   : > { %1061 = vmatpush1.bf16.msra.mxu1 %v1678_v27  ;;  %v1749_v12 = vld [vmem:[#allocation5 + $0x310] ss:$8 sps:$4 sm:$0xff]   ;;  %v1754_v13 = vld [vmem:[#allocation5 + $0x124] ss:$8 sps:$4 sm:$0xff]   ;;  %v1752_v16 = vld [vmem:[#allocation5 + $0x120] ss:$8 sps:$4 sm:$0xff]  }
  0x6f   : > { %1147 = vmatpush1.bf16.msra.mxu0 %v1679_v28  ;;  %1062 = vmatprep.subr.bf16.mxu1 %v1680_v29  ;;  %v1757_v14 = vld [vmem:[#allocation5 + $0x324] ss:$8 sps:$4 sm:$0xff]   ;;  %v1755_v17 = vld [vmem:[#allocation5 + $0x320] ss:$8 sps:$4 sm:$0xff]   ;;  %v1760_v18 = vld [vmem:[#allocation5 + $0x134] ss:$8 sps:$4 sm:$0xff]  }
  0x70   : > { %1148 = vmatprep.subr.bf16.mxu0 %v1682_v30  ;;  %v1763_v19 = vld [vmem:[#allocation5 + $0x334] ss:$8 sps:$4 sm:$0xff]   ;;  %v1758_v20 = vld [vmem:[#allocation5 + $0x130] ss:$8 sps:$4 sm:$0xff]   ;;  %v1766_v22 = vld [vmem:[#allocation5 + $0x144] ss:$8 sps:$4 sm:$0xff]  }
  0x71   : > { %v1761_v21 = vld [vmem:[#allocation5 + $0x330] ss:$8 sps:$4 sm:$0xff]   ;;  %v1769_v23 = vld [vmem:[#allocation5 + $0x344] ss:$8 sps:$4 sm:$0xff]   ;;  %v1764_v25 = vld [vmem:[#allocation5 + $0x140] ss:$8 sps:$4 sm:$0xff]  }
  0x72   : > { %1063 = vmatpush1.bf16.msra.mxu1 %v1684_v31  ;;  %v1815_v24 = vld [vmem:[%s2095_s10 + $0xc] ss:$28 sps:$4 sm:$0xff]   ;;  %v1767_v26 = vld [vmem:[#allocation5 + $0x340] ss:$8 sps:$4 sm:$0xff]   ;;  %v1778_v31 = vld [vmem:[#allocation5 + $0x164] ss:$8 sps:$4 sm:$0xff]  }
  0x73   : > { %1149 = vmatpush1.bf16.msra.mxu0 %v1685_v32  ;;  %1064 = vmatprep.subr.bf16.mxu1 %v1686_v33  ;;  %v1772_v27 = vld [vmem:[#allocation5 + $0x154] ss:$8 sps:$4 sm:$0xff]   ;;  %v1770_v29 = vld [vmem:[#allocation5 + $0x150] ss:$8 sps:$4 sm:$0xff]   ;;  %v1781_v32 = vld [vmem:[#allocation5 + $0x364] ss:$8 sps:$4 sm:$0xff]  }
  0x74   : > { %1150 = vmatprep.subr.bf16.mxu0 %v1688_v34  ;;  %v1775_v28 = vld [vmem:[#allocation5 + $0x354] ss:$8 sps:$4 sm:$0xff]   ;;  %v1773_v30 = vld [vmem:[#allocation5 + $0x350] ss:$8 sps:$4 sm:$0xff]   ;;  %v1776_v33 = vld [vmem:[#allocation5 + $0x160] ss:$8 sps:$4 sm:$0xff]  }
  0x75   : > { %v1779_v34 = vld [vmem:[#allocation5 + $0x360] ss:$8 sps:$4 sm:$0xff]   ;;  %v1809_v52 = vld [vmem:[#allocation5 + $0x1e4] ss:$8 sps:$4 sm:$0xff]   ;;  %s2179_s17 = smov (!%p314_p10, %s1438_s17), 5 }
  0x76   : > { %1065 = vmatpush1.bf16.msra.mxu1 %v1690_v35  ;;  %v1784_v35 = vld [vmem:[#allocation5 + $0x174] ss:$8 sps:$4 sm:$0xff]   ;;  %v1801_v49 = vld [vmem:[#allocation5 + $0x1c0] ss:$8 sps:$4 sm:$0xff]   ;;  %s1439_s18 = sshll.u32 %s2179_s17, 3 }
  0x77   : > { %1151 = vmatpush1.bf16.msra.mxu0 %v1691_v36  ;;  %1066 = vmatprep.subr.bf16.mxu1 %v1692_v37  ;;  %v1787_v36 = vld [vmem:[#allocation5 + $0x374] ss:$8 sps:$4 sm:$0xff]   ;;  %v1782_v37 = vld [vmem:[#allocation5 + $0x170] ss:$8 sps:$4 sm:$0xff]   ;;  %s317_s14 = scalar_lea.vmem %s2161_s7, %s1439_s18 }
  0x78   : > { %1152 = vmatprep.subr.bf16.mxu0 %v1694_v38  ;;  %v1785_v38 = vld [vmem:[#allocation5 + $0x370] ss:$8 sps:$4 sm:$0xff]  }
  0x7a   : > { %1067 = vmatpush1.bf16.msra.mxu1 %v1696_v39  ;;  %v1790_v39 = vld [vmem:[#allocation5 + $0x184] ss:$8 sps:$4 sm:$0xff]  }
  0x7b   : > { %1153 = vmatpush1.bf16.msra.mxu0 %v1697_v40  ;;  %1068 = vmatprep.subr.bf16.mxu1 %v1698_v41  ;;  %v1791_v40 = vld [vmem:[%s2095_s10 + $0x18] ss:$28 sps:$4 sm:$0xff]  }
  0x7c   : > { %1154 = vmatprep.subr.bf16.mxu0 %v1700_v42  ;;  %v1788_v41 = vld [vmem:[#allocation5 + $0x180] ss:$8 sps:$4 sm:$0xff]   ;;  %v1794_v42 = vld [vmem:[#allocation5 + $0x194] ss:$8 sps:$4 sm:$0xff]  }
  0x7e   : > { %1069 = vmatpush1.bf16.msra.mxu1 %v1702_v43  ;;  %v1792_v43 = vld [vmem:[#allocation5 + $0x190] ss:$8 sps:$4 sm:$0xff]  }
  0x7f   : > { %1155 = vmatpush1.bf16.msra.mxu0 %v1703_v44  ;;  %1070 = vmatprep.subr.bf16.mxu1 %v1704_v45  ;;  %v1797_v44 = vld [vmem:[#allocation5 + $0x1a4] ss:$8 sps:$4 sm:$0xff]   ;;  %v1795_v45 = vld [vmem:[#allocation5 + $0x1a0] ss:$8 sps:$4 sm:$0xff]  }
  0x80   : > { %1156 = vmatprep.subr.bf16.mxu0 %v1706_v46  ;;  %v1800_v46 = vld [vmem:[#allocation5 + $0x1b4] ss:$8 sps:$4 sm:$0xff]  }
  0x82   : > { %1071 = vmatpush1.bf16.msra.mxu1 %v1708_v47  ;;  %v1798_v47 = vld [vmem:[#allocation5 + $0x1b0] ss:$8 sps:$4 sm:$0xff]  }
  0x83   : > { %1157 = vmatpush1.bf16.msra.mxu0 %v1709_v48  ;;  %1072 = vmatprep.subr.bf16.mxu1 %v1710_v50  ;;  %v1803_v48 = vld [vmem:[#allocation5 + $0x1c4] ss:$8 sps:$4 sm:$0xff]   ;;  %v1806_v50 = vld [vmem:[#allocation5 + $0x1d4] ss:$8 sps:$4 sm:$0xff]  }
  0x84   : > { %1158 = vmatprep.subr.bf16.mxu0 %v1712_v51  ;;  %v1804_v51 = vld [vmem:[#allocation5 + $0x1d0] ss:$8 sps:$4 sm:$0xff]  }
  0x86   : > { %1073 = vmatpush1.bf16.msra.mxu1 %v1714_v53  ;;  %v1807_v53 = vld [vmem:[#allocation5 + $0x1e0] ss:$8 sps:$4 sm:$0xff]  }
  0x87   : > { %1159 = vmatpush1.bf16.msra.mxu0 %v1715_v54  ;;  %1074 = vmatprep.subr.bf16.mxu1 %v1716_v55  ;;  %v1812_v54 = vld [vmem:[#allocation5 + $0x1f4] ss:$8 sps:$4 sm:$0xff]   ;;  %v1810_v55 = vld [vmem:[#allocation5 + $0x1f0] ss:$8 sps:$4 sm:$0xff]  }
  0x88   : > { %1160 = vmatprep.subr.bf16.mxu0 %v1718_v56  ;;  %v1813_v56 = vld [vmem:[%s2095_s10 + $0x8] ss:$28 sps:$4 sm:$0xff]  }
  0x8a   : > { %1075 = vmatpush1.bf16.msra.mxu1 %v1720_v57 }
  0x8b   : > { %1161 = vmatpush1.bf16.msra.mxu0 %v1721_v58  ;;  %1076 = vmatprep.subr.bf16.mxu1 %v1722_v59 }
  0x8c   : > { %1162 = vmatprep.subr.bf16.mxu0 %v1724_v60 }
  0x8e   : > { %1077 = vmatpush1.bf16.msra.mxu1 %v1726_v61  ;;  %v442_v61 = vlaneseq }
  0x8f   : > { %1163 = vmatpush1.bf16.msra.mxu0 %v1727_v62  ;;  %1078 = vmatprep.subr.bf16.mxu1 %v1728_v63 }
  0x90   : > { %1164 = vmatprep.subr.bf16.mxu0 %v1730_v0  ;;  %v443_v62 = vshrl.u32 %v442_v61, 7  ;;  %v440_v0 = vld [vmem:[%s2156_s2] sm:$0x3] }
  0x92   : > { %1079 = vmatpush1.bf16.msra.mxu1 %v1732_v1  ;;  %v2112_v63 = vsub.s32 0, %v443_v62  ;;  %v2117_v1 = vsub.s32 1, %v443_v62 }
  0x93   : > { %1165 = vmatpush1.bf16.msra.mxu0 %v1733_v2  ;;  %1091 = vmatprep.subr.bf16.mxu1 %v1739_v3 }
  0x94   : > { %1177 = vmatprep.subr.bf16.mxu0 %v1745_v4  ;;  %v445_v2 = vrot.slane %v440_v0, %v2112_v63  ;;  %v449_v3 = vrot.slane %v440_v0, %v2117_v1 }
  0x95   : > { %1081 = vmatmul.mubr.bf16.vlgmr.msra.gmra.mrb[0].mxu1 %v1734_v5 }
  0x96   : > { %1167 = vmatmul.mubr.bf16.vlgmr.msra.gmra.mrb[0].mxu0 %v1740_v7  ;;  %1092 = vmatpush1.bf16.msra.mxu1 %v1737_v6 }
  0x97   : > { %1178 = vmatpush1.bf16.msra.mxu0 %v1743_v8  ;;  %1093 = vmatprep.subr.bf16.mxu1 %v1748_v9 }
  0x98   : > { %1179 = vmatprep.subr.bf16.mxu0 %v1751_v10  ;;  %1209 = vmatprep.mubr.bf16.mxu0 %v1932_v15 }
  0x99   : > { %1123 = vmatprep.mubr.bf16.mxu1 %v1815_v24 }
  0x9a   : > { %1094 = vmatpush1.bf16.msra.mxu1 %v1746_v11 }
  0x9b   : > { %1180 = vmatpush1.bf16.msra.mxu0 %v1749_v12  ;;  %1095 = vmatprep.subr.bf16.mxu1 %v1754_v13 }
  0x9c   : > { %1181 = vmatprep.subr.bf16.mxu0 %v1757_v14 }
  0x9e   : > { %1096 = vmatpush1.bf16.msra.mxu1 %v1752_v16 }
  0x9f   : > { %1182 = vmatpush1.bf16.msra.mxu0 %v1755_v17  ;;  %1097 = vmatprep.subr.bf16.mxu1 %v1760_v18  ;;  %v1233_v18 = vand.u32 127, %v442_v61 }
  0xa0   : > { %1183 = vmatprep.subr.bf16.mxu0 %v1763_v19 }
  0xa1   : > { %v1234_v19 = vadd.s32 128, %v1233_v18 }
  0xa2   : > { %1098 = vmatpush1.bf16.msra.mxu1 %v1758_v20 }
  0xa3   : > { %1184 = vmatpush1.bf16.msra.mxu0 %v1761_v21  ;;  %1099 = vmatprep.subr.bf16.mxu1 %v1766_v22  ;;  %vm1236_vm0 = vcmp.lt.s32.totalorder %v1234_v19, 200 }
  0xa4   : > { %1185 = vmatprep.subr.bf16.mxu0 %v1769_v23 }
  0xa6   : > { %1100 = vmatpush1.bf16.msra.mxu1 %v1764_v25 }
  0xa7   : > { %1186 = vmatpush1.bf16.msra.mxu0 %v1767_v26  ;;  %1101 = vmatprep.subr.bf16.mxu1 %v1772_v27 }
  0xa8   : > { %1187 = vmatprep.subr.bf16.mxu0 %v1775_v28 }
  0xaa   : > { %1102 = vmatpush1.bf16.msra.mxu1 %v1770_v29 }
  0xab   : > { %1188 = vmatpush1.bf16.msra.mxu0 %v1773_v30  ;;  %1103 = vmatprep.subr.bf16.mxu1 %v1778_v31 }
  0xac   : > { %1189 = vmatprep.subr.bf16.mxu0 %v1781_v32 }
  0xae   : > { %1104 = vmatpush1.bf16.msra.mxu1 %v1776_v33 }
  0xaf   : > { %1190 = vmatpush1.bf16.msra.mxu0 %v1779_v34  ;;  %1105 = vmatprep.subr.bf16.mxu1 %v1784_v35 }
  0xb0   : > { %1191 = vmatprep.subr.bf16.mxu0 %v1787_v36 }
  0xb2   : > { %1106 = vmatpush1.bf16.msra.mxu1 %v1782_v37 }
  0xb3   : > { %1192 = vmatpush1.bf16.msra.mxu0 %v1785_v38  ;;  %1107 = vmatprep.subr.bf16.mxu1 %v1790_v39 }
  0xb6   : > { %1210 = vmatmul.mubr.bf16.vlgmr.msra.gmra.mrb[0].mxu0 %v1791_v40  ;;  %1108 = vmatpush1.bf16.msra.mxu1 %v1788_v41 }
  0xb7   : > { %1109 = vmatprep.subr.bf16.mxu1 %v1794_v42  ;;  %v1261_v42 = vld [vmem:[%s2157_s3] sm:$0x3] }
  0xba   : > { %1110 = vmatpush1.bf16.msra.mxu1 %v1792_v43  ;;  %v1277_v43 = vld [vmem:[%s2158_s4] sm:$0x3] }
  0xbb   : > { %1111 = vmatprep.subr.bf16.mxu1 %v1797_v44  ;;  %v1266_v44 = vrot.slane %v1261_v42, %v2112_v63 }
  0xbe   : > { %1112 = vmatpush1.bf16.msra.mxu1 %v1795_v45  ;;  %v1270_v45 = vrot.slane %v1261_v42, %v2117_v1 }
  0xbf   : > { %1113 = vmatprep.subr.bf16.mxu1 %v1800_v46 }
  0xc2   : > { %1114 = vmatpush1.bf16.msra.mxu1 %v1798_v47 }
  0xc3   : > { %1115 = vmatprep.subr.bf16.mxu1 %v1803_v48 }
  0xc6   : > { %1116 = vmatpush1.bf16.msra.mxu1 %v1801_v49  ;;  %v1282_v49 = vrot.slane %v1277_v43, %v2112_v63 }
  0xc7   : > { %1117 = vmatprep.subr.bf16.mxu1 %v1806_v50  ;;  %v1286_v50 = vrot.slane %v1277_v43, %v2117_v1 }
  0xca   : > { %1118 = vmatpush1.bf16.msra.mxu1 %v1804_v51 }
  0xcb   : > { %1119 = vmatprep.subr.bf16.mxu1 %v1809_v52 }
  0xce   : > { %1120 = vmatpush1.bf16.msra.mxu1 %v1807_v53  ;;  %v1305_v53 = vld [vmem:[%s2159_s5] sm:$0x3] }
  0xcf   : > { %1121 = vmatprep.subr.bf16.mxu1 %v1812_v54 }
  0xd2   : > { %1122 = vmatpush1.bf16.msra.mxu1 %v1810_v55 }
  0xd5   : > { %1124 = vmatmul.mubr.bf16.vlgmr.msra.gmra.mrb[0].mxu1 %v1813_v56 }
 0x189   : > { %v1211_v57 = vpop.f32.mrb[0].mxu0 }
 0x18a   : > { %v1213_v58 = vpop.f32.mrb[1].mxu0 }
 0x18b   : > { %v1215_v59 = vpop.f32.mrb[2].mxu0 }
 0x18c   : > { %v1217_v60 = vpop.f32.mrb[3].mxu0 }
 0x1a8   : > { %v1125_v4 = vpop.f32.mrb[0].mxu1 }
 0x1a9   : > { %v1564_v5 = vadd.f32 %v1125_v4, %v445_v2  ;;  %v1127_v6 = vpop.f32.mrb[1].mxu1 }
 0x1aa   : > { %v1566_v7 = vadd.f32 %v1127_v6, %v449_v3  ;;  %v1129_v8 = vpop.f32.mrb[2].mxu1 }
 0x1ab   : > { %v1568_v9 = vadd.f32 %v1129_v8, %v445_v2  ;;  %v1131_v10 = vpop.f32.mrb[3].mxu1  ;;  %v1565_v11 = vadd.f32 %v1564_v5, %v1211_v57 }
 0x1ac   : > { %v1570_v12 = vadd.f32 %v1131_v10, %v449_v3  ;;  %v1567_v13 = vadd.f32 %v1566_v7, %v1213_v58 }
 0x1ad   : > { %v1569_v14 = vadd.f32 %v1568_v9, %v1215_v59  ;;  %v1310_v59 = vrot.slane %v1305_v53, %v2112_v63 }
 0x1ae   : > { %v1571_v15 = vadd.f32 %v1570_v12, %v1217_v60  ;;  %v1220_v16 = vadd.f32 %v1567_v13, %v1565_v11  ;;  %v1314_v60 = vrot.slane %v1305_v53, %v2117_v1 }
 0x1b0   : > { %1221 = vadd.xlane.f32.xlu0 %v1220_v16  ;;  %v1223_v17 = vadd.f32 %v1571_v15, %v1569_v14 }
 0x1b4   : > { %1224 = vadd.xlane.f32.xlu0 %v1223_v17 }
 0x23d   : > { %v1222_v20 = vpop.xlane.xlu0 %1221 }
 0x23e   : > { %v1226_v21 = vmul.f32 0.005, %v1222_v20 }
 0x240   : > { %v1228_v22 = vsub.f32 %v1565_v11, %v1226_v21  ;;  %v1229_v23 = vsub.f32 %v1567_v13, %v1226_v21 }
 0x241   : > { %v1225_v24 = vpop.xlane.xlu0 %1224 }
 0x242   : > { %v1227_v25 = vmul.f32 0.005, %v1225_v24  ;;  %v1238_v26 = vsel %vm1236_vm0, %v1229_v23, 0.0  ;;  %v1241_v27 = vmul.f32 %v1228_v22, %v1228_v22 }
 0x243   : > { %v1242_v28 = vmul.f32 %v1238_v26, %v1238_v26 }
 0x244   : > { %v1230_v29 = vsub.f32 %v1569_v14, %v1227_v25  ;;  %v1231_v30 = vsub.f32 %v1571_v15, %v1227_v25  ;;  %v1559_v15 = vld [vmem:[#allocation2] ss:$0 sm:$0xff] }
 0x245   : > { %v1245_v31 = vadd.f32 %v1242_v28, %v1241_v27 }
 0x246   : > { %v1240_v32 = vsel %vm1236_vm0, %v1231_v30, 0.0  ;;  %v1243_v33 = vmul.f32 %v1230_v29, %v1230_v29 }
 0x247   : > { %1246 = vadd.xlane.f32.xlu1 %v1245_v31  ;;  %v1244_v34 = vmul.f32 %v1240_v32, %v1240_v32 }
 0x249   : > { %v1248_v35 = vadd.f32 %v1244_v34, %v1243_v33 }
 0x24b   : > { %1249 = vadd.xlane.f32.xlu1 %v1248_v35 }
 0x2d4   : > { %v1247_v36 = vpop.xlane.xlu1 %1246 }
 0x2d5   : > { %v1251_v37 = vmul.f32 0.005, %v1247_v36 }
 0x2d7   : > { %v1253_v38 = vadd.f32 1e-05, %v1251_v37 }
 0x2d8   : > { %v1250_v39 = vpop.xlane.xlu1 %1249 }
 0x2d9   : > { %1816 = vrsqrt.f32 %v1253_v38  ;;  %v1252_v40 = vmul.f32 0.005, %v1250_v39 }
 0x2db   : > { %v1254_v41 = vadd.f32 1e-05, %v1252_v40 }
 0x2dd   : > { %1818 = vrsqrt.f32 %v1254_v41 }
 0x2e3   : > { %v1817_v46 = vpop.eup %1816 }
 0x2e4   : > { %v1257_v47 = vmul.f32 %v1817_v46, %v1228_v22  ;;  %v1258_v48 = vmul.f32 %v1817_v46, %v1238_v26 }
 0x2e6   : > { %v1273_v51 = vmul.f32 %v1266_v44, %v1257_v47  ;;  %v1274_v52 = vmul.f32 %v1270_v45, %v1258_v48 }
 0x2e7   : > { %v1819_v54 = vpop.eup %1818 }
 0x2e8   : > { %v1259_v55 = vmul.f32 %v1819_v54, %v1230_v29  ;;  %v1260_v56 = vmul.f32 %v1819_v54, %v1240_v32  ;;  %v1289_v57 = vadd.f32 %v1282_v49, %v1273_v51  ;;  %v1290_v58 = vadd.f32 %v1286_v50, %v1274_v52 }
 0x2ea   : > { %vm1293_vm1 = vcmp.ge.f32.partialorder %v1289_v57, 0.0  ;;  %vm1294_vm2 = vcmp.ge.f32.partialorder %v1290_v58, 0.0  ;;  %v1297_v61 = vmul.f32 0.02, %v1289_v57  ;;  %v1298_v62 = vmul.f32 0.02, %v1290_v58 }
 0x2eb   : > { %v1275_v0 = vmul.f32 %v1266_v44, %v1259_v55  ;;  %v1276_v2 = vmul.f32 %v1270_v45, %v1260_v56 }
 0x2ec   : > { %v1301_v3 = vsel %vm1293_vm1, %v1289_v57, %v1297_v61  ;;  %v1302_v4 = vsel %vm1294_vm2, %v1290_v58, %v1298_v62 }
 0x2ed   : > { %v1317_v5 = vmul.f32 %v1310_v59, %v1301_v3  ;;  %v1318_v6 = vmul.f32 %v1314_v60, %v1302_v4  ;;  %v1291_v7 = vadd.f32 %v1282_v49, %v1275_v0  ;;  %v1292_v8 = vadd.f32 %v1286_v50, %v1276_v2 }
 0x2ef   : > { %v1321_v9 = vadd.f32 %v1318_v6, %v1317_v5  ;;  %vm1295_vm3 = vcmp.ge.f32.partialorder %v1291_v7, 0.0  ;;  %vm1296_vm4 = vcmp.ge.f32.partialorder %v1292_v8, 0.0  ;;  %v1299_v10 = vmul.f32 0.02, %v1291_v7 }
 0x2f0   : > { %v1300_v11 = vmul.f32 0.02, %v1292_v8 }
 0x2f1   : > { %1322 = vadd.xlane.f32.xlu0 %v1321_v9  ;;  %v1303_v63 = vsel %vm1295_vm3, %v1291_v7, %v1299_v10 }
 0x2f2   : > { %v1304_v1 = vsel %vm1296_vm4, %v1292_v8, %v1300_v11  ;;  %v1319_v12 = vmul.f32 %v1310_v59, %v1303_v63 }
 0x2f3   : > { %v1320_v13 = vmul.f32 %v1314_v60, %v1304_v1 }
 0x2f5   : > { %v1324_v14 = vadd.f32 %v1320_v13, %v1319_v12 }
 0x2f7   : > { %1325 = vadd.xlane.f32.xlu1 %v1324_v14 }
 0x37e   : > { %v1323_v16 = vpop.xlane.xlu0 %1322 }
 0x37f   : > { %v1334_v17 = vadd.f32 %v1559_v15, %v1323_v16 }
 0x381   : > { %v1560_v18 = vmul.f32 -1.442695, %v1334_v17 }
 0x383   : > { %1820 = vpow2.f32 %v1560_v18 }
 0x384   : > { %v1326_v19 = vpop.xlane.xlu1 %1325 }
 0x385   : > { %v1335_v20 = vadd.f32 %v1559_v15, %v1326_v19 }
 0x387   : > { %v1561_v21 = vmul.f32 -1.442695, %v1335_v20 }
 0x389   : > { %1822 = vpow2.f32 %v1561_v21 }
 0x38d   : > { %v1821_v22 = vpop.eup %1820 }
 0x38e   : > { %v1342_v23 = vadd.f32 1.0, %v1821_v22 }
 0x390   : > { %1824 = vrcp.f32 %v1342_v23 }
 0x393   : > { %v1823_v24 = vpop.eup %1822 }
 0x394   : > { %v1343_v25 = vadd.f32 1.0, %v1823_v24 }
 0x396   : > { %1826 = vrcp.f32 %v1343_v25 }
 0x39a   : > { %v1825_v26 = vpop.eup %1824 }
 0x39b   : > { %1349 = vst.msk [vmem:[%s317_s14] sm:$0xff] %vm1348_vm5, %v1825_v26 }
 0x3a0   : > { %v1827_v27 = vpop.eup %1826 }
 0x3a1   : > { %1350 = vst.msk [vmem:[%s317_s14 + $0x8] sm:$0xff] %vm1348_vm5, %v1827_v27 }
 0x3a2 PF: > { %p20_p6 = scmp.ge.s32.totalorder %s2023_s13, 5   ;;  %s2174_s26 = smov %s1916_s27 }
 0x3a3   : > { %s2175_s27 = smov %s1920_s28  ;;  %s2176_s28 = smov %s2049_s16 }
 0x3a4   : > { %s2177_s29 = smov %s2023_s13  ;;  %22 = sbr.rel (!%p20_p6) target bundleno = 7 (0x7), region = 92 }
 0x3ab   :  { %1373 = vsyncpa [#allocation4], 1 }
 0x3ac   :  { %1375 = vsyncpa [#allocation4 + $0x1], 1 }
 0x3ad   :  { %1376 = vsyncpa [#allocation6], 1 }

</bundles_post_ra>
